<compile_context>
chip_gen: v7x
topology: tpu7x:2x2x1
jax: 0.10.0
libtpu: 0.0.40
codegen_flags: <defaults>
</compile_context>

<pallas_src>
from functools import partial

import jax
import jax.numpy as jnp
from jax.experimental import pallas as pl
from jax.experimental.pallas import tpu as pltpu


def _wavenet_kernel(x_ref, halo_ref, w_ref, b_ref, out_ref, *, nt):
    # x_ref   : (C_in, Lt)           current length-tile of the input (f32)
    # halo_ref: (B*nt, C_in, 2)      resident; [:,:,0]=col left of tile, [:,:,1]=right
    # w_ref   : (3, 2*C_pad, C_in)   tap-major fused [tanh ; sigmoid] weights
    # b_ref   : (2*C_pad, 1)         fused biases (f32)
    # out_ref : (C_out, Lt)
    x = x_ref[...]                                  # f32, reused as residual
    c_in, lt = x.shape
    c_out = out_ref.shape[0]
    c_pad = b_ref.shape[0] // 2

    # Per-tile halo columns (resident array, indexed by grid position).
    h = halo_ref[pl.program_id(0) * nt + pl.program_id(1)]       # (C_in, 2)

    # Shifted copies via XLU roll + lane-mask splice of the halo column:
    #   x_m1[:, l] = x[:, l-1]  (left halo at l == 0)
    #   x_p1[:, l] = x[:, l+1]  (right halo at l == lt-1)
    lane = jax.lax.broadcasted_iota(jnp.int32, (c_in, lt), 1)
    x_m1 = jnp.where(lane == 0, h[:, 0:1], pltpu.roll(x, 1, 1))
    x_p1 = jnp.where(lane == lt - 1, h[:, 1:2], pltpu.roll(x, lt - 1, 1))

    # Three accumulating MXU dots (no stacked-operand concat/cast, f32 in,
    # f32 accumulate).  Tap k of the k=3 conv pairs with x[l-1+k].
    cdt = w_ref.dtype
    acc = jnp.dot(w_ref[0], x_m1.astype(cdt), preferred_element_type=jnp.float32)
    acc += jnp.dot(w_ref[1], x.astype(cdt), preferred_element_type=jnp.float32)
    acc += jnp.dot(w_ref[2], x_p1.astype(cdt), preferred_element_type=jnp.float32)
    acc = acc + b_ref[...]                          # single post-matmul bias add

    # Gate split at sublane-aligned row offsets (0 and c_pad).
    gated = jnp.tanh(acc[:c_out]) * jax.nn.sigmoid(acc[c_pad:c_pad + c_out])
    out_ref[...] = (gated + x).astype(out_ref.dtype)


def wavenet_layer_init(x, w_tanh, b_tanh, w_sig, b_sig,
                       *, compute_dtype=jnp.float32, max_block_l=None):
    """x: (B, C, L) f32. Weights: (C_out, C_in, 3), biases: (C_out,).

    compute_dtype: dtype of the fused weight / matmul operands (f32 default;
    bf16 optional for very large C where the MXU actually matters).
    max_block_l: optional cap on the auto-sized L tile (testing / tuning).
    """
    B, C_in, L = x.shape
    C_out = w_tanh.shape[0]
    assert C_in == C_out, "residual add requires in_channels == out_channels"
    C_pad = -(-C_out // 8) * 8                      # sublane-align the gate split

    # ---- generation-aware VMEM budget ----
    try:
        vmem_cap = int(pltpu.get_tpu_info().vmem_capacity_bytes)
    except Exception:                               # pragma: no cover
        vmem_cap = 64 << 20                         # conservative (v7x per-core)
    vmem_limit = max(min(vmem_cap - (8 << 20), 112 << 20), 32 << 20)

    w_bytes = 3 * (2 * C_pad) * C_in * jnp.dtype(compute_dtype).itemsize
    fixed = 2 * w_bytes + 2 * (2 * C_pad) * 4       # double-buffered weight/bias
    tile_budget = max(2 << 20, vmem_limit // 2 - fixed)
    # bytes per lane column held live per step:
    per_col = 4 * (2 * C_in + 2 * C_out)            # double-buffered x / out blocks
    per_col += 4 * (2 * C_in + 2 * C_pad + C_out)   # x_m1, x_p1, acc, gated temps

    # ---- auto-size a lane-dense L tile ----
    if L % 128 == 0:
        lt_cap = max(128, min(8192, (tile_budget // per_col) // 128 * 128))
        if max_block_l is not None:
            lt_cap = min(lt_cap, max(128, (max_block_l // 128) * 128))
        Lt = min(L, lt_cap)
        while L % Lt != 0:
            Lt -= 128
        if B == 1 and Lt == L and L % 256 == 0:
            Lt = L // 2                             # keep >=2 steps for v7x's 2 TCs
    else:
        Lt = L                                      # small / odd lengths: single tile
    nt = L // Lt

    # ---- fuse gates and taps: (3 taps, [tanh ; sigmoid] rows, C_in) ----
    wt = jnp.transpose(w_tanh, (2, 0, 1))           # (3, C_out, C_in), tap-major
    ws = jnp.transpose(w_sig, (2, 0, 1))
    w_fused = jnp.zeros((3, 2 * C_pad, C_in), compute_dtype)
    w_fused = w_fused.at[:, :C_out, :].set(wt.astype(compute_dtype))
    w_fused = w_fused.at[:, C_pad:C_pad + C_out, :].set(ws.astype(compute_dtype))
    b_fused = jnp.zeros((2 * C_pad, 1), jnp.float32)
    b_fused = b_fused.at[:C_out, 0].set(b_tanh.astype(jnp.float32))
    b_fused = b_fused.at[C_pad:C_pad + C_out, 0].set(b_sig.astype(jnp.float32))

    # ---- tiny per-tile halo columns (resident; no full-tensor jnp.pad) ----
    xr = x.reshape(B, C_in, nt, Lt)
    zero = jnp.zeros((B, C_in, 1), x.dtype)
    left = jnp.concatenate([zero, xr[:, :, :-1, -1]], axis=2)    # (B, C, nt)
    right = jnp.concatenate([xr[:, :, 1:, 0], zero], axis=2)     # (B, C, nt)
    halo = jnp.stack([left, right], axis=-1).transpose(0, 2, 1, 3)
    halo = halo.reshape(B * nt, C_in, 2).astype(jnp.float32)

    flops = 2 * B * L * (2 * C_pad) * (3 * C_in)
    transcendentals = 2 * B * C_out * L
    bytes_accessed = int(
        4 * (x.size + B * C_out * L)
        + halo.size * 4
        + w_fused.size * jnp.dtype(compute_dtype).itemsize
        + b_fused.size * 4)

    y = pl.pallas_call(
        partial(_wavenet_kernel, nt=nt),
        out_shape=jax.ShapeDtypeStruct((B, C_out, L), x.dtype),
        grid_spec=pltpu.PrefetchScalarGridSpec(
            num_scalar_prefetch=0,
            grid=(B, nt),
            in_specs=[
                pl.BlockSpec((None, C_in, Lt), lambda b, j: (b, 0, j)),
                # grid-invariant blocks below: DMA'd once, revisited every step
                pl.BlockSpec((B * nt, C_in, 2), lambda b, j: (0, 0, 0)),
                pl.BlockSpec((3, 2 * C_pad, C_in), lambda b, j: (0, 0, 0)),
                pl.BlockSpec((2 * C_pad, 1), lambda b, j: (0, 0)),
            ],
            out_specs=pl.BlockSpec((None, C_out, Lt), lambda b, j: (b, 0, j)),
        ),
        compiler_params=pltpu.CompilerParams(
            dimension_semantics=("parallel", "parallel"),
            vmem_limit_bytes=int(vmem_limit)),
        cost_estimate=pl.CostEstimate(
            flops=flops, transcendentals=transcendentals,
            bytes_accessed=bytes_accessed),
    )(x, halo, w_fused, b_fused)

    # skip = Identity(gated); PyTorch's in-place `x += residual` makes both
    # returned tensors alias the same buffer = gated + residual.
    return y, y


def _reference(x, w_tanh, b_tanh, w_sig, b_sig):
    # pure-JAX reference conv1d (NCL, pad=1, k=3), full f32 precision
    def conv(x, w, b):
        y = jax.lax.conv_general_dilated(
            x, w, window_strides=(1,), padding=((1, 1),),
            dimension_numbers=("NCH", "OIH", "NCH"),
            precision=jax.lax.Precision.HIGHEST)
        return y + b[None, :, None]
    g = jnp.tanh(conv(x, w_tanh, b_tanh)) * jax.nn.sigmoid(conv(x, w_sig, b_sig))
    out = g + x
    return out, out


if __name__ == "__main__":
    B, C, L = 2, 8, 256      # in_channels == out_channels == 8
    key = jax.random.PRNGKey(0)
    kx, kwt, kbt, kws, kbs = jax.random.split(key, 5)

    # deterministic "PyTorch-like" init: U(-bound, bound), bound = 1/sqrt(C_in*k)
    bound = 1.0 / (C * 3) ** 0.5
    x = jax.random.normal(kx, (B, C, L), dtype=jnp.float32)
    w_tanh = jax.random.uniform(kwt, (C, C, 3), jnp.float32, -bound, bound)
    b_tanh = jax.random.uniform(kbt, (C,), jnp.float32, -bound, bound)
    w_sig = jax.random.uniform(kws, (C, C, 3), jnp.float32, -bound, bound)
    b_sig = jax.random.uniform(kbs, (C,), jnp.float32, -bound, bound)

    ref_out, ref_skip = _reference(x, w_tanh, b_tanh, w_sig, b_sig)

    # Auto-sized tiles (whole L per batch row at this small shape).
    out, skip = wavenet_layer_init(x, w_tanh, b_tanh, w_sig, b_sig)
    out = jax.block_until_ready(out)
    skip = jax.block_until_ready(skip)
    # f32 operands end-to-end; small margin for MXU multi-pass f32 rounding.
    assert jnp.allclose(out, ref_out, atol=5e-3, rtol=5e-3), \
        float(jnp.max(jnp.abs(out - ref_out)))
    assert jnp.allclose(skip, ref_skip, atol=5e-3, rtol=5e-3)

    # Force 128-wide tiles so the inter-tile halo exchange path is exercised.
    out2, _ = wavenet_layer_init(x, w_tanh, b_tanh, w_sig, b_sig, max_block_l=128)
    out2 = jax.block_until_ready(out2)
    assert jnp.allclose(out2, ref_out, atol=5e-3, rtol=5e-3), \
        float(jnp.max(jnp.abs(out2 - ref_out)))

    print("KERNEL_OK")
</pallas_src>

<mosaic_0001>
module attributes {stable_mosaic.version = 11 : i64} {
  func.func @_wavenet_kernel(%arg0: i32, %arg1: i32, %arg2: memref<1x8x256xf32, #tpu.memory_space<vmem>>, %arg3: memref<2x8x2xf32, #tpu.memory_space<vmem>>, %arg4: memref<3x16x8xf32, #tpu.memory_space<vmem>>, %arg5: memref<16x1xf32, #tpu.memory_space<vmem>>, %arg6: memref<1x8x256xf32, #tpu.memory_space<vmem>>) attributes {dimension_semantics = [#tpu.dimension_semantics<parallel>, #tpu.dimension_semantics<parallel>], iteration_bounds = array<i64: 2, 1>, scalar_prefetch = 0 : i64, scratch_operands = 0 : i64, tpu.core_type = #tpu.core_type<tc>, window_params = [{transform_indices = @transform_0, window_bounds = array<i64: 1, 8, 256>}, {pipeline_mode = #tpu.pipeline_mode<synchronous>, transform_indices = @transform_1, window_bounds = array<i64: 2, 8, 2>}, {pipeline_mode = #tpu.pipeline_mode<synchronous>, transform_indices = @transform_2, window_bounds = array<i64: 3, 16, 8>}, {pipeline_mode = #tpu.pipeline_mode<synchronous>, transform_indices = @transform_3, window_bounds = array<i64: 16, 1>}, {transform_indices = @transform_4, window_bounds = array<i64: 1, 8, 256>}]} {
    %c0 = arith.constant 0 : index
    %c0_0 = arith.constant 0 : index
    %c0_1 = arith.constant 0 : index
    %0 = vector.load %arg2[%c0, %c0_0, %c0_1] : memref<1x8x256xf32, #tpu.memory_space<vmem>>, vector<1x8x256xf32>
    %1 = vector.shape_cast %0 : vector<1x8x256xf32> to vector<8x256xf32>
    %c1_i32 = arith.constant 1 : i32
    %2 = arith.muli %arg0, %c1_i32 : i32
    %3 = arith.addi %2, %arg1 : i32
    %4 = arith.index_cast %3 : i32 to index
    %c0_2 = arith.constant 0 : index
    %c0_3 = arith.constant 0 : index
    %5 = vector.load %arg3[%4, %c0_2, %c0_3] : memref<2x8x2xf32, #tpu.memory_space<vmem>>, vector<1x8x2xf32>
    %6 = vector.shape_cast %5 : vector<1x8x2xf32> to vector<8x2xf32>
    %7 = tpu.iota {dimensions = array<i32: 1>} : vector<8x256xi32>
    %c0_i32 = arith.constant 0 : i32
    %8 = vector.broadcast %c0_i32 : i32 to vector<8x256xi32>
    %9 = arith.cmpi eq, %7, %8 : vector<8x256xi32>
    %10 = vector.extract_strided_slice %6 {offsets = [0, 0], sizes = [8, 1], strides = [1, 1]} : vector<8x2xf32> to vector<8x1xf32>
    %c1_i32_4 = arith.constant 1 : i32
    %11 = tpu.dynamic_rotate %1 by %c1_i32_4 dim 1 : vector<8x256xf32>, i32 -> vector<8x256xf32>
    %12 = vector.shape_cast %10 : vector<8x1xf32> to vector<8x1xf32>
    %13 = vector.broadcast %12 : vector<8x1xf32> to vector<8x256xf32>
    %14 = arith.select %9, %13, %11 : vector<8x256xi1>, vector<8x256xf32>
    %c255_i32 = arith.constant 255 : i32
    %15 = vector.broadcast %c255_i32 : i32 to vector<8x256xi32>
    %16 = arith.cmpi eq, %7, %15 : vector<8x256xi32>
    %17 = vector.extract_strided_slice %6 {offsets = [0, 1], sizes = [8, 1], strides = [1, 1]} : vector<8x2xf32> to vector<8x1xf32>
    %c255_i32_5 = arith.constant 255 : i32
    %18 = tpu.dynamic_rotate %1 by %c255_i32_5 dim 1 : vector<8x256xf32>, i32 -> vector<8x256xf32>
    %19 = vector.shape_cast %17 : vector<8x1xf32> to vector<8x1xf32>
    %20 = vector.broadcast %19 : vector<8x1xf32> to vector<8x256xf32>
    %21 = arith.select %16, %20, %18 : vector<8x256xi1>, vector<8x256xf32>
    %c0_6 = arith.constant 0 : index
    %c0_7 = arith.constant 0 : index
    %c0_8 = arith.constant 0 : index
    %22 = vector.load %arg4[%c0_6, %c0_7, %c0_8] : memref<3x16x8xf32, #tpu.memory_space<vmem>>, vector<1x16x8xf32>
    %23 = vector.shape_cast %22 : vector<1x16x8xf32> to vector<16x8xf32>
    %cst = arith.constant dense<0.000000e+00> : vector<16x256xf32>
    %24 = tpu.matmul %23, %14, %cst {dimension_numbers = #tpu.dot_dimension_numbers<[1], [0], [0], [1], [0, 0, 1, 1], [], []>} : vector<16x8xf32>, vector<8x256xf32>, vector<16x256xf32> -> vector<16x256xf32>
    %c1 = arith.constant 1 : index
    %c0_9 = arith.constant 0 : index
    %c0_10 = arith.constant 0 : index
    %25 = vector.load %arg4[%c1, %c0_9, %c0_10] : memref<3x16x8xf32, #tpu.memory_space<vmem>>, vector<1x16x8xf32>
    %26 = vector.shape_cast %25 : vector<1x16x8xf32> to vector<16x8xf32>
    %cst_11 = arith.constant dense<0.000000e+00> : vector<16x256xf32>
    %27 = tpu.matmul %26, %1, %cst_11 {dimension_numbers = #tpu.dot_dimension_numbers<[1], [0], [0], [1], [0, 0, 1, 1], [], []>} : vector<16x8xf32>, vector<8x256xf32>, vector<16x256xf32> -> vector<16x256xf32>
    %28 = arith.addf %24, %27 : vector<16x256xf32>
    %c2 = arith.constant 2 : index
    %c0_12 = arith.constant 0 : index
    %c0_13 = arith.constant 0 : index
    %29 = vector.load %arg4[%c2, %c0_12, %c0_13] : memref<3x16x8xf32, #tpu.memory_space<vmem>>, vector<1x16x8xf32>
    %30 = vector.shape_cast %29 : vector<1x16x8xf32> to vector<16x8xf32>
    %cst_14 = arith.constant dense<0.000000e+00> : vector<16x256xf32>
    %31 = tpu.matmul %30, %21, %cst_14 {dimension_numbers = #tpu.dot_dimension_numbers<[1], [0], [0], [1], [0, 0, 1, 1], [], []>} : vector<16x8xf32>, vector<8x256xf32>, vector<16x256xf32> -> vector<16x256xf32>
    %32 = arith.addf %28, %31 : vector<16x256xf32>
    %c0_15 = arith.constant 0 : index
    %c0_16 = arith.constant 0 : index
    %33 = vector.load %arg5[%c0_15, %c0_16] : memref<16x1xf32, #tpu.memory_space<vmem>>, vector<16x1xf32>
    %34 = vector.broadcast %33 : vector<16x1xf32> to vector<16x256xf32>
    %35 = arith.addf %32, %34 : vector<16x256xf32>
    %36 = vector.extract_strided_slice %35 {offsets = [0, 0], sizes = [8, 256], strides = [1, 1]} : vector<16x256xf32> to vector<8x256xf32>
    %37 = math.tanh %36 : vector<8x256xf32>
    %38 = vector.extract_strided_slice %35 {offsets = [8, 0], sizes = [8, 256], strides = [1, 1]} : vector<16x256xf32> to vector<8x256xf32>
    %39 = arith.negf %38 : vector<8x256xf32>
    %40 = math.exp %39 : vector<8x256xf32>
    %cst_17 = arith.constant 1.000000e+00 : f32
    %41 = vector.broadcast %cst_17 : f32 to vector<8x256xf32>
    %42 = arith.addf %41, %40 : vector<8x256xf32>
    %43 = arith.divf %41, %42 : vector<8x256xf32>
    %44 = arith.mulf %37, %43 : vector<8x256xf32>
    %45 = arith.addf %44, %1 : vector<8x256xf32>
    %c0_18 = arith.constant 0 : index
    %c0_19 = arith.constant 0 : index
    %c0_20 = arith.constant 0 : index
    %46 = vector.load %arg6[%c0_18, %c0_19, %c0_20] : memref<1x8x256xf32, #tpu.memory_space<vmem>>, vector<1x8x256xf32>
    %47 = vector.shape_cast %46 : vector<1x8x256xf32> to vector<8x256xf32>
    %48 = vector.shape_cast %45 : vector<8x256xf32> to vector<1x8x256xf32>
    tpu.vector_store %arg6[%c0_18, %c0_19, %c0_20], %48 {strides = array<i32>} : memref<1x8x256xf32, #tpu.memory_space<vmem>>, vector<1x8x256xf32>,
    return
  }
  func.func @transform_0(%arg0: i32, %arg1: i32) -> (i32, i32, i32) {
    %c0_i32 = arith.constant 0 : i32
    %c0_i32_0 = arith.constant 0 : i32
    return %arg0, %c0_i32, %arg1 : i32, i32, i32
  }
  func.func @transform_1(%arg0: i32, %arg1: i32) -> (i32, i32, i32) {
    %c0_i32 = arith.constant 0 : i32
    %c0_i32_0 = arith.constant 0 : i32
    %c0_i32_1 = arith.constant 0 : i32
    %c0_i32_2 = arith.constant 0 : i32
    return %c0_i32, %c0_i32_0, %c0_i32_1 : i32, i32, i32
  }
  func.func @transform_2(%arg0: i32, %arg1: i32) -> (i32, i32, i32) {
    %c0_i32 = arith.constant 0 : i32
    %c0_i32_0 = arith.constant 0 : i32
    %c0_i32_1 = arith.constant 0 : i32
    %c0_i32_2 = arith.constant 0 : i32
    return %c0_i32, %c0_i32_0, %c0_i32_1 : i32, i32, i32
  }
  func.func @transform_3(%arg0: i32, %arg1: i32) -> (i32, i32) {
    %c0_i32 = arith.constant 0 : i32
    %c0_i32_0 = arith.constant 0 : i32
    %c0_i32_1 = arith.constant 0 : i32
    return %c0_i32, %c0_i32_0 : i32, i32
  }
  func.func @transform_4(%arg0: i32, %arg1: i32) -> (i32, i32, i32) {
    %c0_i32 = arith.constant 0 : i32
    %c0_i32_0 = arith.constant 0 : i32
    return %arg0, %c0_i32, %arg1 : i32, i32, i32
  }
}

</mosaic_0001>

<bundles_post_ra>
// kernel: tpu_custom_call.1
= control target key start
LH: loop header
LB: loop body
LE: loop exit
PB: predicated region body
PF: predicated region fallthrough
CT: control target
= control target key end

     0   :  { %9 = vsyncpa [#allocation3], 0  ;;  %s1043_s0 = inlined_call_operand.vmem [shape: f32[2,8,256], index: 0, kind: input, shape index: {}]   ;;  %s1044_s1 = inlined_call_operand.vmem [shape: f32[2,8,2], index: 1, kind: input, shape index: {}]   ;;  %s1045_s2 = inlined_call_operand.vmem [shape: f32[3,16,8], index: 2, kind: input, shape index: {}]   ;;  %s1046_s3 = inlined_call_operand.vmem [shape: f32[16,1], index: 3, kind: input, shape index: {}]   ;;  %s1047_s4 = inlined_call_operand.hbm [shape: f32[2,8,256], index: 4, kind: output, shape index: {}]  }
   0x1   :  { %11 = vsyncpa [#allocation3 + $0x1], 0  ;;  %s885_s15 = smov 0   ;;  %s887_s16 = smov 0  }
   0x2   :  { %s889_s17 = smov 0   ;;  %s891_s18 = smov 0  }
   0x3   :  { %s893_s19 = smov 0   ;;  %s895_s20 = smov 0  }
   0x4 LB: > { %s661_s21 = sadd.s32 4294967295, %s852_s20   ;;  %s662_s22 = sadd.s32 4294967294, %s852_s20   ;;  %s852_s20 = sphi %s895_s20, %s17_s20   ;;  %s848_s19 = sphi %s893_s19, %s1054_s19   ;;  %s844_s18 = sphi %s891_s18, %s1053_s18   ;;  %s840_s17 = sphi %s889_s17, %s1052_s17   ;;  %s836_s16 = sphi %s887_s16, %s1051_s16   ;;  %s832_s15 = sphi %s885_s15, %s1050_s15  }
   0x5   : > { %s29_s23 = sadd.s32 1, %s848_s19  ;;  %s129_s24 = sadd.s32 1, %s840_s17 }
   0x6   : > { %p31_p0 = scmp.ge.s32.totalorder %s29_s23, 2  ;;  %p139_p1 = scmp.ne.s32.totalorder %s840_s17, %s836_s16 }
   0x7   : > { %p140_p2 = scmp.eq.s32.totalorder %s661_s21, 1  ;;  %p145_p3 = scmp.ne.s32.totalorder %s836_s16, %s832_s15 }
   0x8   : > { %s1056_s23 = smov (%p31_p0, %s29_s23), 0  ;;  %p146_p5 = scmp.eq.s32.totalorder %s662_s22, 1 }
   0x9   : > { %p925_p4 = por %p140_p2, %p139_p1  ;;  %s124_s26 = ssub.s32 %s848_s19, %s1056_s23 }
   0xa   : > { %p665_p6 = scmp.ge.s32.totalorder %s852_s20, 1  ;;  %p127_p7 = scmp.eq.s32.totalorder %s124_s26, 0 }
   0xb   : > { %p932_p8 = por %p146_p5, %p145_p3  ;;  %p186_p9 = scmp.lt.s32.totalorder %s852_s20, 3 }
   0xc   : > { %s938_s28 = scalar_select %p127_p7, %s840_s17, %s129_s24  }
   0xd   : > { %p187_p10 = pnand %p665_p6, %p186_p9 }
   0xe   : > { %s669_s29 = sshll.u32 (!%p187_p10), %s844_s18, 3  ;;  %p217_p11 = scmp.lt.s32.totalorder (!%p187_p10), %s844_s18, 1  ;;  %v854_v0 = vmov (!%p187_p10), 0   ;;  %v855_v1 = vmov (!%p187_p10), 1   ;;  %v856_v3 = vmov (!%p187_p10), 0.0   ;;  %v670_v6 = vld [vmem:[%s1045_s2 + $0x10] sm:$0xff] (!%p187_p10)  ;;  %v233_v10 = vlaneseq (!%p187_p10) }
   0xf   : > { %190 = sbr.rel (%p187_p10) target bundleno = 432 (0x1b0), region = 36  ;;  %759 = vset.pattern.permute.xlu0 (!%p187_p10), %v854_v0  ;;  %s231_s6 = scalar_lea.vmem (!%p187_p10), %s1044_s1, %s669_s29  ;;  %760 = vset.pattern.permute.xlu1 (!%p187_p10), %v855_v1  ;;  %vm272_vm0 = vcmask (!%p187_p10), 64512   ;;  %v671_v7 = vld [vmem:[%s1045_s2 + $0x18] sm:$0xff] (!%p187_p10)  ;;  %v530_v8 = vld [vmem:[%s1046_s3 + $0x8] sm:$0xff] (!%p187_p10)  ;;  %v529_v9 = vld [vmem:[%s1046_s3] sm:$0xff] (!%p187_p10) }
  0x10   : > { %v232_v2 = vld [vmem:[%s231_s6] sm:$0xff] (!%p187_p10)  ;;  %343 = vmatprep.mubr.f32.mxu1 (!%p187_p10), %v856_v3  ;;  %426 = vmatprep.mubr.f32.mxu0 (!%p187_p10), %v856_v3  ;;  %s857_s12 = smov (!%p187_p10), 1   ;;  %s858_s21 = smov (!%p187_p10), 127   ;;  %v234_v11 = vand.u32 (!%p187_p10), 127, %v233_v10  ;;  %v268_v18 = vld [vmem:[%s1045_s2 + $0x8] sm:$0xff] (!%p187_p10) }
  0x11   : > { %247 = vperm.xlu0 (!%p187_p10), %759, %v232_v2   ;;  %v267_v17 = vld [vmem:[%s1045_s2] sm:$0xff] (!%p187_p10)  ;;  %v677_v28 = vld [vmem:[%s1045_s2 + $0x28] sm:$0xff] (!%p187_p10)  ;;  %s213_s14 = sand.u32 (!%p187_p10), 1, %s836_s16   ;;  %s688_s22 = sshll.u32 (!%p187_p10), %s844_s18, 8 }
  0x12   : > { %vm242_vm1 = vcmp.lt.s32.totalorder (!%p187_p10), %v234_v11, 1  ;;  %vm236_vm2 = vcmp.eq.s32.totalorder (!%p187_p10), %v234_v11, 0  ;;  %v235_v20 = vadd.s32 (!%p187_p10), 128, %v234_v11  ;;  %vm258_vm3 = vcmp.lt.s32.totalorder (!%p187_p10), %v234_v11, 127  ;;  %v676_v26 = vld [vmem:[%s1045_s2 + $0x20] sm:$0xff] (!%p187_p10)  ;;  %s996_s5 = scalar_lea.hbm (!%p187_p10), %s1047_s4, %s688_s22 }
  0x14   : > { %vm253_vm4 = vcmp.eq.s32.totalorder (!%p187_p10), %v235_v20, 255 }
  0x16   : > { %s218_s7 = scalar_select %p217_p11, %s844_s18, 1 }
  0x17   : > { %s566_s18 = scalar_lea.sflag [#allocation3], %s213_s14 }
  0x18   : > { %s687_s8 = sshll.u32 %s218_s7, 4  ;;  %s859_s7 = smov [#allocation2]  }
  0x19   : > { %s224_s11 = scalar_lea.vmem %s1043_s0, %s687_s8  ;;  %s778_s8 = sshll.u32 %s859_s7, 4  ;;  %s779_s8 = int_to_ptr.vmem [resolvable:$false] %s778_s8 }
  0x1a   : > { %v949_v4 = vld [vmem:[%s224_s11 + $0x8] sm:$0xff]  ;;  %v951_v5 = vld [vmem:[%s224_s11] sm:$0xff]  ;;  %s780_s9 = scalar_lea.vmem %s779_s8, 512 }
  0x1b   : > { %240 = vrot.lane.b32.xlu1 %v949_v4, %s857_s12  ;;  %238 = vrot.lane.b32.xlu0 %v951_v5, %s857_s12 }
  0x1c   : > { %279 = vmatprep.subr.mxu1 %v949_v4 }
  0x1d   : > { %280 = vmatpush1.msra.mxu1 %v951_v5 }
  0x1e   : > { %672 = vmatmul.mubr.msk.f32.vlgmr.msra.gmra.mrb[0].mxu1 %vm272_vm0, %v670_v6 }
  0x1f   : > { %262 = vperm.xlu1 %760, %v232_v2   ;;  %254 = vrot.lane.b32.xlu0 %v951_v5, %s858_s21 }
  0x20   : > { %349 = vmatprep.mubr.f32.mxu1 %v856_v3 }
  0x22   : > { %673 = vmatmul.mubr.msk.f32.gmra.mrb[2].mxu1 %vm272_vm0, %v671_v7 }
  0x23   : > { %538 = vperm.xlu0 %759, %v530_v8   ;;  %256 = vrot.lane.b32.xlu1 %v949_v4, %s858_s21  ;;  %s666_s21 = sshll.u32 %s213_s14, 4 }
  0x24   : > { %432 = vmatprep.mubr.f32.mxu1 %v856_v3  ;;  %761 = vset.pattern.permute.xlu1 %v854_v0  ;;  %s215_s24 = scalar_lea.vmem [#allocation2], %s666_s21 }
  0x25   : > { %s582_s26 = sshll.u32 %s215_s24, 4  ;;  %s998_s26 = int_to_ptr.vmem [resolvable:$true] %s582_s26 }
  0x26   : > { %s774_s6 = scalar_lea.vmem %s998_s26, 256  ;;  %p781_p1 = scmp.lt.s32.totalorder %s998_s26, %s779_s8 }
  0x27   : > { %533 = vperm.xlu1 %761, %v529_v9   ;;  %p775_p12 = scmp.ne.s32.totalorder %s998_s26, %s774_s6  ;;  %p782_p2 = scmp.lt.s32.totalorder %s780_s9, %s774_s6 }
  0x29   : > { %p776_p13 = pnand %p775_p12, %p925_p4  ;;  %p783_p3 = por %p782_p2, %p781_p1 }
  0x2b   : > { %p777_p0 = pneg %p776_p13 }
  0x2d   : > { %p784_p5 = pnand %p783_p3, %p777_p0 }
  0x8d   : > { %v241_v13 = vpop.permute.xlu1 %240 }
  0x90   : > { %v248_v12 = vpop.permute.xlu0 %247 }
  0x94   : > { %v239_v14 = vpop.permute.xlu0 %238 }
  0x95   : > { %v244_v15 = vsel %vm242_vm1, %v241_v13, %v239_v14  ;;  %v243_v16 = vsel %vm242_vm1, %v239_v14, %v241_v13 }
  0x96   : > { %362 = vmatprep.subr.mxu0 %v243_v16  ;;  %689 = vmatprep.subr.mxu1 %v243_v16  ;;  %v250_v19 = vsel %vm236_vm2, %v248_v12, %v244_v15 }
  0x97   : > { %363 = vmatpush1.msra.mxu0 %v250_v19  ;;  %690 = vmatpush1.msra.mxu1 %v250_v19 }
  0x98   : > { %674 = vmatmul.mubr.msk.f32.vlgmr.msra.gmra.mrb[0].mxu0 %vm272_vm0, %v267_v17  ;;  %675 = vmatmul.mubr.msk.f32.vlgmr.msra.gmra.mrb[2].mxu1 %vm272_vm0, %v268_v18  ;;  %v255_v22 = vpop.permute.xlu0 %254 }
  0x99   : > { %512 = vmatprep.mubr.f32.mxu0 %v856_v3 }
  0x9e   : > { %v263_v21 = vpop.permute.xlu1 %262 }
  0xa2   : > { %v257_v23 = vpop.permute.xlu1 %256  ;;  %v539_v40 = vpop.permute.xlu0 %538 }
  0xa3   : > { %v260_v24 = vsel %vm258_vm3, %v257_v23, %v255_v22  ;;  %v259_v27 = vsel %vm258_vm3, %v255_v22, %v257_v23 }
  0xa4   : > { %v266_v25 = vsel %vm253_vm4, %v263_v21, %v260_v24 }
  0xa5   : > { %448 = vmatprep.subr.mxu0 %v266_v25 }
  0xa6   : > { %449 = vmatpush1.msra.mxu0 %v259_v27  ;;  %v534_v46 = vpop.permute.xlu1 %533 }
  0xa7   : > { %678 = vmatmul.mubr.msk.f32.vlgmr.msra.gmra.mrb[0].mxu0 %vm272_vm0, %v676_v26 }
  0xa8   : > { %518 = vmatprep.mubr.f32.mxu0 %v856_v3 }
  0xab   : > { %679 = vmatmul.mubr.msk.f32.gmra.mrb[2].mxu0 %vm272_vm0, %v677_v28 }
  0xf1   : > { %v345_v29 = vpop.f32.mrb[0].mxu1 }
  0xf2   : > { %v347_v30 = vpop.f32.mrb[1].mxu1 }
 0x16b   : > { %v434_v31 = vpop.f32.mrb[2].mxu1 }
 0x16c   : > { %v436_v32 = vpop.f32.mrb[3].mxu1 }
 0x17a   : > { %v514_v33 = vpop.f32.mrb[0].mxu0 }
 0x17b   : > { %v691_v34 = vadd.f32 %v514_v33, %v345_v29  ;;  %v516_v35 = vpop.f32.mrb[1].mxu0 }
 0x17c   : > { %v692_v36 = vadd.f32 %v516_v35, %v347_v30 }
 0x17d   : > { %v541_v47 = vadd.f32 %v691_v34, %v534_v46 }
 0x17e   : > { %v520_v37 = vpop.f32.mrb[2].mxu0  ;;  %v542_v48 = vadd.f32 %v692_v36, %v534_v46 }
 0x17f   : > { %v693_v38 = vadd.f32 %v520_v37, %v434_v31  ;;  %v522_v39 = vpop.f32.mrb[3].mxu0 }
 0x180   : > { %v694_v41 = vadd.f32 %v522_v39, %v436_v32 }
 0x181   : > { %v543_v42 = vadd.f32 %v693_v38, %v539_v40 }
 0x182   : > { %v544_v43 = vadd.f32 %v694_v41, %v539_v40 }
 0x183   : > { %v680_v44 = vmul.f32 -1.442695, %v543_v42 }
 0x184   : > { %v681_v45 = vmul.f32 -1.442695, %v544_v43 }
 0x185   : > { %762 = vpow2.f32 %v680_v44 }
 0x186   : > { %764 = vpow2.f32 %v681_v45 }
 0x187   : > { %766 = vtanh.f32 %v541_v47 }
 0x188   : > { %768 = vtanh.f32 %v542_v48 }
 0x18f   : > { %v763_v49 = vpop.eup %762 }
 0x190   : > { %v765_v50 = vpop.eup %764  ;;  %v553_v51 = vadd.f32 1.0, %v763_v49 }
 0x191   : > { %v554_v52 = vadd.f32 1.0, %v765_v50  ;;  %v767_v53 = vpop.eup %766 }
 0x192   : > { %770 = vrcp.f32 %v553_v51  ;;  %v769_v54 = vpop.eup %768 }
 0x193   : > { %772 = vrcp.f32 %v554_v52 }
 0x19c   : > { %v771_v55 = vpop.eup %770 }
 0x19d   : > { %v773_v56 = vpop.eup %772  ;;  %v559_v57 = vmul.f32 %v771_v55, %v767_v53 }
 0x19e   : > { %v560_v58 = vmul.f32 %v773_v56, %v769_v54 }
 0x19f   : > { %v561_v59 = vadd.f32 %v559_v57, %v951_v5 }
 0x1a0   : > { %v562_v60 = vadd.f32 %v560_v58, %v949_v4 }
 0x1a1   : > { %563 = vst [vmem:[%s215_s24] sm:$0xff] %v561_v59 }
 0x1a2   : > { %564 = vst [vmem:[%s215_s24 + $0x8] sm:$0xff] %v562_v60 }
 0x1a3   : > { %787 = shalt.err (!%p784_p5)
}
 0x1a4   : > { %s788_s10 = scalar_lea.hbm %s996_s5, 256  ;;  %s792_s13 = scalar_lea.hbm %s1047_s4, 512 }
 0x1a5   : > { %p789_p6 = scmp.ne.s32.totalorder %s996_s5, %s788_s10  ;;  %p793_p10 = scmp.lt.u32.totalorder %s996_s5, %s1047_s4 }
 0x1a6   : > { %p794_p11 = scmp.lt.u32.totalorder %s792_s13, %s788_s10  ;;  %p796_p13 = scmp.lt.u32.totalorder %s788_s10, %s996_s5 }
 0x1a7   : > { %p790_p7 = pnand %p789_p6, %p925_p4 }
 0x1a8   : > { %p795_p12 = por %p794_p11, %p793_p10 }
 0x1a9   : > { %p791_p9 = pneg %p790_p7 }
 0x1aa   : > { %p797_p0 = por %p796_p13, %p795_p12 }
 0x1ac   : > { %p798_p1 = pnand %p797_p0, %p791_p9 }
 0x1ae   : > { %801 = shalt.err (!%p798_p1)
}
 0x1af   : > { %699 = dma.vmem_to_hbm [thread:$0]  (%p925_p4), %s998_s26, 256, %s996_s5, %s566_s18  }
 0x1b0 PF: > { %p705_p2 = scmp.ge.s32.totalorder %s852_s20, 2  ;;  %s594_s22 = sand.u32 1, %s832_s15  }
 0x1b1   : > { %s595_s24 = scalar_lea.sflag [#allocation3], %s594_s22 }
 0x1b2   : > { %p702_p3 = pnand %p705_p2, %p932_p8 }
 0x1b4   : > { %827 = dma.done.wait (!%p702_p3), %s595_s24, 256  }
 0x1b5   : > { %829 = vsyncadd (!%p702_p3), %s595_s24, 4294967040  ;;  %s17_s20 = sadd.s32 1, %s852_s20   ;;  %s1050_s15 = smov %s836_s16 }
 0x1b6   : > { %p14_p5 = scmp.ge.s32.totalorder %s17_s20, 4   ;;  %s1051_s16 = smov %s840_s17 }
 0x1b7   : > { %s1052_s17 = smov %s938_s28  ;;  %s1053_s18 = smov %s848_s19 }
 0x1b8   : > { %s1054_s19 = smov %s1056_s23  ;;  %16 = sbr.rel (!%p14_p5) target bundleno = 4 (0x4), region = 74 }
 0x1bf   :  { %600 = vsyncpa [#allocation3], 1 }
 0x1c0   :  { %602 = vsyncpa [#allocation3 + $0x1], 1 }

</bundles_post_ra>
